<compile_context>
chip_gen: v5e
topology: v5e:2x2
jax: 0.10.0
libtpu: 0.0.40
codegen_flags: <defaults>
</compile_context>

<pallas_src>
import jax
import jax.numpy as jnp
from jax.experimental import pallas as pl
from jax.experimental.pallas import tpu as pltpu


def _round_up(x, m):
    return (x + m - 1) // m * m


def _vmem_capacity_bytes():
    try:
        return int(pltpu.get_tpu_info().vmem_capacity_bytes)
    except Exception:
        return 64 * 1024 * 1024  # v7x-safe fallback


def _fused_mlp_kernel(x_ref, w_ref, b_ref, o_ref, act_ref):
    """One grid step = one layer applied to one batch tile.

    x_ref  : (tb, in_pad) f32        input tile (DMA'd once per batch tile)
    w_ref  : (L, d_pad, d_pad)       VMEM-resident weight stack   (resident)
             (1, d_pad, d_pad)       this layer's streamed weight (streamed)
    b_ref  : (L, 1, d_pad) f32       all biases, VMEM-resident
    o_ref  : (tb, out_pad)           final output tile (last layer only)
    act_ref: (tb, d_pad) f32         activation carried across layers
    """
    layer = pl.program_id(1)
    in_pad = x_ref.shape[1]
    d_pad = act_ref.shape[1]

    @pl.when(layer == 0)
    def _():
        if in_pad < d_pad:                       # static (trace-time) branch
            act_ref[...] = jnp.zeros_like(act_ref)
            act_ref[:, :in_pad] = x_ref[...]
        else:
            act_ref[...] = x_ref[...]

    # Static choice: resident stack -> dynamic layer index; streamed -> 0.
    wi = layer if w_ref.shape[0] > 1 else 0
    bi = layer if b_ref.shape[0] > 1 else 0

    a = act_ref[...].astype(w_ref.dtype)         # MXU operand (bf16 / f32)
    y = jnp.dot(a, w_ref[wi], preferred_element_type=jnp.float32)
    y = y + b_ref[bi]                            # f32 epilogue
    act_ref[...] = jnp.maximum(y, 0.0)           # ReLU after every layer

    @pl.when(layer == pl.num_programs(1) - 1)
    def _():
        o_ref[...] = act_ref[:, :o_ref.shape[1]].astype(o_ref.dtype)


def pack_mlp_params(params, compute_dtype=jnp.bfloat16):
    """Pad & stack the layer params ONCE (call at init, not per forward).

    Zero padding is exact: padded weight rows/cols and bias lanes are 0, so
    padded activation lanes stay 0 through every relu(x @ W + b).
    Returns (w_stack, b_stack, out_dim).
    """
    in_dim = params[0][0].shape[0]
    out_dims = [w.shape[1] for w, _ in params]
    num_layers = len(params)
    d_pad = _round_up(max([in_dim] + out_dims), 128)

    w_stack = jnp.zeros((num_layers, d_pad, d_pad), compute_dtype)
    b_stack = jnp.zeros((num_layers, 1, d_pad), jnp.float32)
    for i, (w, b) in enumerate(params):
        di, do = w.shape
        w_stack = w_stack.at[i, :di, :do].set(w.astype(compute_dtype))
        b_stack = b_stack.at[i, 0, :do].set(b.astype(jnp.float32))
    return w_stack, b_stack, out_dims[-1]


def mlp_forward_pallas(x, w_stack, b_stack, *, out_dim, max_batch_tile=512):
    """relu(... relu(relu(x@W0+b0)@W1+b1) ...) — whole MLP in one pallas_call."""
    batch, in_dim = x.shape
    num_layers, d_pad, _ = w_stack.shape
    in_pad = _round_up(in_dim, 128)
    out_pad = _round_up(out_dim, 128)
    w_itemsize = jnp.dtype(w_stack.dtype).itemsize
    out_itemsize = jnp.dtype(x.dtype).itemsize

    # --- per-chip VMEM budget (v5e/v6e: 128 MiB, v7x: 64 MiB physical) -----
    vmem_cap = _vmem_capacity_bytes()
    vmem_limit = int(min(0.85 * vmem_cap, 112 * 2**20))
    budget = vmem_limit - 4 * 2**20

    weight_stack_bytes = num_layers * d_pad * d_pad * w_itemsize
    # Resident weights (loaded once, never re-streamed per batch tile) if the
    # whole stack -- conservatively counted double-buffered -- fits in half
    # the budget.
    resident = 2 * weight_stack_bytes <= budget // 2

    def vmem_needed(tb, res):
        w_bytes = 2 * (weight_stack_bytes if res
                       else d_pad * d_pad * w_itemsize)
        return (2 * tb * in_pad * 4             # x block (f32, double-buffered)
                + 2 * tb * out_pad * out_itemsize
                + 2 * num_layers * d_pad * 4    # biases (resident)
                + tb * d_pad * 4                # f32 activation scratch
                + w_bytes)

    # MXU-aligned batch tile (multiple of 128), shrunk until it fits VMEM.
    tb = max(128, min(_round_up(batch, 128), max_batch_tile))
    while tb > 128 and vmem_needed(tb, resident) > budget:
        tb -= 128
    if resident and vmem_needed(tb, resident) > budget:
        resident = False                        # fall back to streamed layers
    # TODO(synk): if a single streamed (d_pad x d_pad) weight block still
    # exceeds the budget (hidden dims >= ~2048 on v7x's 64 MiB VMEM), the
    # weight must additionally be N-tiled; DQN-sized MLPs never reach that.

    b_pad = _round_up(batch, tb)
    n_bt = b_pad // tb
    # Feed both v7x TensorCores when the whole batch fits one big tile and
    # the split is free (resident weights -> no extra weight DMA).
    if resident and n_bt == 1 and tb % 256 == 0 and batch > tb // 2:
        tb //= 2
        b_pad = _round_up(batch, tb)
        n_bt = b_pad // tb

    # --- pad the (small) input; weights/biases were packed once at init ----
    x_p = jnp.pad(x.astype(jnp.float32),
                  ((0, b_pad - batch), (0, in_pad - in_dim)))

    if resident:
        w_spec = pl.BlockSpec((num_layers, d_pad, d_pad),
                              lambda bi, li: (0, 0, 0))
    else:
        w_spec = pl.BlockSpec((1, d_pad, d_pad), lambda bi, li: (li, 0, 0))
    b_spec = pl.BlockSpec((num_layers, 1, d_pad), lambda bi, li: (0, 0, 0))

    flops = 2 * b_pad * d_pad * d_pad * num_layers
    bytes_accessed = (b_pad * in_pad * 4
                      + weight_stack_bytes * (1 if resident else n_bt)
                      + num_layers * d_pad * 4
                      + b_pad * out_pad * out_itemsize)

    out_p = pl.pallas_call(
        _fused_mlp_kernel,
        out_shape=jax.ShapeDtypeStruct((b_pad, out_pad), x.dtype),
        grid_spec=pltpu.PrefetchScalarGridSpec(
            num_scalar_prefetch=0,
            grid=(n_bt, num_layers),             # layer (carry) axis last
            in_specs=[
                pl.BlockSpec((tb, in_pad), lambda bi, li: (bi, 0)),
                w_spec,
                b_spec,
            ],
            out_specs=pl.BlockSpec((tb, out_pad), lambda bi, li: (bi, 0)),
            scratch_shapes=[pltpu.VMEM((tb, d_pad), jnp.float32)],
        ),
        compiler_params=pltpu.CompilerParams(
            dimension_semantics=("parallel", "arbitrary"),
            vmem_limit_bytes=vmem_limit,
        ),
        cost_estimate=pl.CostEstimate(
            flops=flops, transcendentals=0, bytes_accessed=bytes_accessed),
    )(x_p, w_stack, b_stack)

    return out_p[:batch, :out_dim]


mlp_forward = jax.jit(
    mlp_forward_pallas, static_argnames=("out_dim", "max_batch_tile"))


def init_mlp_params(key, input_dim, output_dim, hidden_dim):
    """Mirror of the PyTorch MLP: Linear(in,out) for
    zip([input_dim]+hidden, hidden+[output_dim]), each followed by ReLU.
    Weights stored as (in_dim, out_dim) == nn.Linear weight.T."""
    input_dims = [input_dim] + list(hidden_dim)
    output_dims = list(hidden_dim) + [output_dim]
    params = []
    for in_d, out_d in zip(input_dims, output_dims):
        key, kw, kb = jax.random.split(key, 3)
        bound = 1.0 / float(in_d) ** 0.5
        w = jax.random.uniform(kw, (in_d, out_d), jnp.float32, -bound, bound)
        b = jax.random.uniform(kb, (out_d,), jnp.float32, -bound, bound)
        params.append((w, b))
    return params


def mlp_forward_ref(x, params):
    # Pure-JAX reference.
    for w, b in params:
        x = jnp.maximum(x @ w + b, 0.0)
    return x


if __name__ == "__main__":
    key = jax.random.PRNGKey(0)
    batch = 8
    input_dim = 16
    hidden_dim = [32, 32]
    output_dim = 8

    kx, kp = jax.random.split(key)
    x = jax.random.normal(kx, (batch, input_dim), jnp.float32)
    params = init_mlp_params(kp, input_dim, output_dim, hidden_dim)

    ref = mlp_forward_ref(x, params)

    # Full-precision path (f32 MXU operands) -> tight tolerance.
    w32, b32, od = pack_mlp_params(params, compute_dtype=jnp.float32)
    out_f32 = mlp_forward(x, w32, b32, out_dim=od)
    jax.block_until_ready(out_f32)
    assert out_f32.shape == (batch, output_dim)
    assert jnp.allclose(out_f32, ref, atol=1e-4, rtol=1e-4)

    # Default fast path (bf16 MXU operands, f32 accumulation) -> bf16 tolerance.
    wbf, bbf, od = pack_mlp_params(params)          # bf16 weights, packed once
    out_bf16 = mlp_forward(x, wbf, bbf, out_dim=od)
    jax.block_until_ready(out_bf16)
    assert out_bf16.shape == (batch, output_dim)
    assert jnp.allclose(out_bf16, ref, atol=5e-2, rtol=5e-2)

    print("KERNEL_OK")
</pallas_src>

<mosaic_0001>
module attributes {stable_mosaic.version = 11 : i64} {
  func.func @_fused_mlp_kernel(%arg0: i32, %arg1: i32, %arg2: memref<128x128xf32, #tpu.memory_space<vmem>>, %arg3: memref<3x128x128xf32, #tpu.memory_space<vmem>>, %arg4: memref<3x1x128xf32, #tpu.memory_space<vmem>>, %arg5: memref<128x128xf32, #tpu.memory_space<vmem>>, %arg6: memref<128x128xf32, #tpu.memory_space<vmem>>) attributes {dimension_semantics = [#tpu.dimension_semantics<parallel>, #tpu.dimension_semantics<arbitrary>], iteration_bounds = array<i64: 1, 3>, scalar_prefetch = 0 : i64, scratch_operands = 1 : i64, tpu.core_type = #tpu.core_type<tc>, window_params = [{transform_indices = @transform_0, window_bounds = array<i64: 128, 128>}, {pipeline_mode = #tpu.pipeline_mode<synchronous>, transform_indices = @transform_1, window_bounds = array<i64: 3, 128, 128>}, {pipeline_mode = #tpu.pipeline_mode<synchronous>, transform_indices = @transform_2, window_bounds = array<i64: 3, 1, 128>}, {transform_indices = @transform_3, window_bounds = array<i64: 128, 128>}]} {
    %c0_i32 = arith.constant 0 : i32
    %0 = arith.cmpi eq, %arg1, %c0_i32 : i32
    %1 = arith.extui %0 : i1 to i32
    %c0_i32_0 = arith.constant 0 : i32
    %2 = arith.cmpi ne, %1, %c0_i32_0 : i32
    scf.if %2 {
      %c0_10 = arith.constant 0 : index
      %c0_11 = arith.constant 0 : index
      %19 = vector.load %arg2[%c0_10, %c0_11] : memref<128x128xf32, #tpu.memory_space<vmem>>, vector<128x128xf32>
      %c0_12 = arith.constant 0 : index
      %c0_13 = arith.constant 0 : index
      %20 = vector.load %arg6[%c0_12, %c0_13] : memref<128x128xf32, #tpu.memory_space<vmem>>, vector<128x128xf32>
      tpu.vector_store %arg6[%c0_12, %c0_13], %19 {strides = array<i32>} : memref<128x128xf32, #tpu.memory_space<vmem>>, vector<128x128xf32>,
    } else {
    }
    %c0 = arith.constant 0 : index
    %c0_1 = arith.constant 0 : index
    %3 = vector.load %arg6[%c0, %c0_1] : memref<128x128xf32, #tpu.memory_space<vmem>>, vector<128x128xf32>
    %4 = arith.index_cast %arg1 : i32 to index
    %c0_2 = arith.constant 0 : index
    %c0_3 = arith.constant 0 : index
    %5 = vector.load %arg3[%4, %c0_2, %c0_3] : memref<3x128x128xf32, #tpu.memory_space<vmem>>, vector<1x128x128xf32>
    %6 = vector.shape_cast %5 : vector<1x128x128xf32> to vector<128x128xf32>
    %cst = arith.constant dense<0.000000e+00> : vector<128x128xf32>
    %7 = tpu.matmul %3, %6, %cst {dimension_numbers = #tpu.dot_dimension_numbers<[1], [0], [0], [1], [0, 0, 1, 1], [], []>} : vector<128x128xf32>, vector<128x128xf32>, vector<128x128xf32> -> vector<128x128xf32>
    %8 = arith.index_cast %arg1 : i32 to index
    %c0_4 = arith.constant 0 : index
    %c0_5 = arith.constant 0 : index
    %9 = vector.load %arg4[%8, %c0_4, %c0_5] : memref<3x1x128xf32, #tpu.memory_space<vmem>>, vector<1x1x128xf32>
    %10 = vector.shape_cast %9 : vector<1x1x128xf32> to vector<1x128xf32>
    %11 = vector.broadcast %10 : vector<1x128xf32> to vector<128x128xf32>
    %12 = arith.addf %7, %11 : vector<128x128xf32>
    %cst_6 = arith.constant 0.000000e+00 : f32
    %13 = vector.broadcast %cst_6 : f32 to vector<128x128xf32>
    %14 = arith.maximumf %12, %13 : vector<128x128xf32>
    %c0_7 = arith.constant 0 : index
    %c0_8 = arith.constant 0 : index
    %15 = vector.load %arg6[%c0_7, %c0_8] : memref<128x128xf32, #tpu.memory_space<vmem>>, vector<128x128xf32>
    tpu.vector_store %arg6[%c0_7, %c0_8], %14 {strides = array<i32>} : memref<128x128xf32, #tpu.memory_space<vmem>>, vector<128x128xf32>,
    %c2_i32 = arith.constant 2 : i32
    %16 = arith.cmpi eq, %arg1, %c2_i32 : i32
    %17 = arith.extui %16 : i1 to i32
    %c0_i32_9 = arith.constant 0 : i32
    %18 = arith.cmpi ne, %17, %c0_i32_9 : i32
    scf.if %18 {
      %c0_10 = arith.constant 0 : index
      %c0_11 = arith.constant 0 : index
      %19 = vector.load %arg6[%c0_10, %c0_11] : memref<128x128xf32, #tpu.memory_space<vmem>>, vector<128x128xf32>
      %c0_12 = arith.constant 0 : index
      %c0_13 = arith.constant 0 : index
      %20 = vector.load %arg5[%c0_12, %c0_13] : memref<128x128xf32, #tpu.memory_space<vmem>>, vector<128x128xf32>
      tpu.vector_store %arg5[%c0_12, %c0_13], %19 {strides = array<i32>} : memref<128x128xf32, #tpu.memory_space<vmem>>, vector<128x128xf32>,
    } else {
    }
    return
  }
  func.func @transform_0(%arg0: i32, %arg1: i32) -> (i32, i32) {
    %c0_i32 = arith.constant 0 : i32
    %c0_i32_0 = arith.constant 0 : i32
    return %arg0, %c0_i32 : i32, i32
  }
  func.func @transform_1(%arg0: i32, %arg1: i32) -> (i32, i32, i32) {
    %c0_i32 = arith.constant 0 : i32
    %c0_i32_0 = arith.constant 0 : i32
    %c0_i32_1 = arith.constant 0 : i32
    %c0_i32_2 = arith.constant 0 : i32
    return %c0_i32, %c0_i32_0, %c0_i32_1 : i32, i32, i32
  }
  func.func @transform_2(%arg0: i32, %arg1: i32) -> (i32, i32, i32) {
    %c0_i32 = arith.constant 0 : i32
    %c0_i32_0 = arith.constant 0 : i32
    %c0_i32_1 = arith.constant 0 : i32
    %c0_i32_2 = arith.constant 0 : i32
    return %c0_i32, %c0_i32_0, %c0_i32_1 : i32, i32, i32
  }
  func.func @transform_3(%arg0: i32, %arg1: i32) -> (i32, i32) {
    %c0_i32 = arith.constant 0 : i32
    %c0_i32_0 = arith.constant 0 : i32
    return %arg0, %c0_i32 : i32, i32
  }
}

</mosaic_0001>

<bundles_post_ra>
// kernel: mlp_forward_pallas.1
= control target key start
LH: loop header
LB: loop body
LE: loop exit
PB: predicated region body
PF: predicated region fallthrough
CT: control target
= control target key end

     0   :  { %8 = vsyncpa [#allocation4], 0  ;;  %s671_s12 = smov 0   ;;  %s673_s13 = smov 0   ;;  %s830_s0 = inlined_call_operand.vmem [shape: f32[128,128], index: 0, kind: input, shape index: {}]   ;;  %s831_s1 = inlined_call_operand.hbm [shape: f32[3,128,128], index: 1, kind: input, shape index: {}]   ;;  %s832_s2 = inlined_call_operand.vmem [shape: f32[3,1,128], index: 2, kind: input, shape index: {}]   ;;  %s833_s3 = inlined_call_operand.vmem [shape: f32[128,128], index: 3, kind: output, shape index: {}]  }
   0x1   :  { %s675_s14 = smov 0  }
   0x2 LB: > { %s491_s15 = sadd.s32 4294967295, %s646_s14   ;;  %s23_s16 = sadd.s32 1, %s642_s13  ;;  %s646_s14 = sphi %s675_s14, %s14_s14   ;;  %s642_s13 = sphi %s673_s13, %s835_s13   ;;  %s638_s12 = sphi %s671_s12, %s834_s12  }
   0x3   : > { %p24_p0 = scmp.ge.s32.totalorder %s23_s16, 3  ;;  %p492_p1 = scmp.ge.s32.totalorder %s646_s14, 1 }
   0x4   : > { %p125_p2 = scmp.lt.s32.totalorder %s646_s14, 4  ;;  %p560_p4 = scmp.eq.s32.totalorder %s491_s15, 0 }
   0x5   : > { %s837_s16 = smov (%p24_p0, %s23_s16), 0  ;;  %s145_s19 = sshll.u32 %s831_s1, 4  ;;  %s146_s19 = int_to_ptr.hbm [resolvable:$true] %s145_s19 }
   0x6   : > { %p126_p3 = pnand %p492_p1, %p125_p2  ;;  %s648_s20 = smov [#allocation3]  }
   0x7   : > { %s147_s21 = sshll.u32 %s648_s20, 4  ;;  %s649_s22 = smov 128   ;;  %s148_s21 = int_to_ptr.vmem [resolvable:$true] %s147_s21 }
   0x8   : > { %p556_p5 = pneg %p126_p3  ;;  %s650_s23 = smov 8  }
   0x9   : > { %166 = sbr.rel (%p126_p3) target bundleno = 252 (0xfc), region = 32 }
   0xa   : > { %p557_p6 = pnand %p560_p4, %p556_p5 }
   0xc   : > { %559 = dma.hbm_to_vmem [thread:$0]  (!%p557_p6), %s146_s19, 6144, %s148_s21, [#allocation4], %s649_s22, %s649_s22, %s650_s23  }
   0xe   : > { %633 = dma.done.wait (%p560_p4), [#allocation4], 6144  }
   0xf   : > { %635 = vsyncadd (%p560_p4), [#allocation4], 4294961152  ;;  %p497_p7 = scmp.ne.s32.totalorder %s638_s12, 0 }
  0x11   : > { %206 = sbr.rel (%p497_p7) target bundleno = 39 (0x27), region = 40 }
  0x16   : > { %v207_v0 = vld [vmem:[%s830_s0] sm:$0xff]  ;;  %v208_v1 = vld [vmem:[%s830_s0 + $0x8] sm:$0xff]  ;;  %v209_v2 = vld [vmem:[%s830_s0 + $0x10] sm:$0xff] }
  0x17   : > { %223 = vst [vmem:[#allocation2 + $0x30] sm:$0xff] %v207_v0  ;;  %v210_v3 = vld [vmem:[%s830_s0 + $0x18] sm:$0xff]  ;;  %v211_v4 = vld [vmem:[%s830_s0 + $0x20] sm:$0xff]  ;;  %v212_v5 = vld [vmem:[%s830_s0 + $0x28] sm:$0xff] }
  0x18   : > { %224 = vst [vmem:[#allocation2] sm:$0xff] %v208_v1  ;;  %v213_v6 = vld [vmem:[%s830_s0 + $0x30] sm:$0xff]  ;;  %v214_v7 = vld [vmem:[%s830_s0 + $0x38] sm:$0xff]  ;;  %v215_v8 = vld [vmem:[%s830_s0 + $0x40] sm:$0xff] }
  0x19   : > { %225 = vst [vmem:[#allocation2 + $0x58] sm:$0xff] %v209_v2  ;;  %v216_v9 = vld [vmem:[%s830_s0 + $0x48] sm:$0xff]  ;;  %v217_v10 = vld [vmem:[%s830_s0 + $0x50] sm:$0xff]  ;;  %v218_v11 = vld [vmem:[%s830_s0 + $0x58] sm:$0xff] }
  0x1a   : > { %226 = vst [vmem:[#allocation2 + $0x18] sm:$0xff] %v210_v3  ;;  %v219_v12 = vld [vmem:[%s830_s0 + $0x60] sm:$0xff]  ;;  %v220_v13 = vld [vmem:[%s830_s0 + $0x68] sm:$0xff]  ;;  %v221_v14 = vld [vmem:[%s830_s0 + $0x70] sm:$0xff] }
  0x1b   : > { %227 = vst [vmem:[#allocation2 + $0x50] sm:$0xff] %v211_v4  ;;  %v222_v15 = vld [vmem:[%s830_s0 + $0x78] sm:$0xff] }
  0x1c   : > { %228 = vst [vmem:[#allocation2 + $0x68] sm:$0xff] %v212_v5 }
  0x1d   : > { %229 = vst [vmem:[#allocation2 + $0x8] sm:$0xff] %v213_v6 }
  0x1e   : > { %230 = vst [vmem:[#allocation2 + $0x48] sm:$0xff] %v214_v7 }
  0x1f   : > { %231 = vst [vmem:[#allocation2 + $0x40] sm:$0xff] %v215_v8 }
  0x20   : > { %232 = vst [vmem:[#allocation2 + $0x20] sm:$0xff] %v216_v9 }
  0x21   : > { %233 = vst [vmem:[#allocation2 + $0x10] sm:$0xff] %v217_v10 }
  0x22   : > { %234 = vst [vmem:[#allocation2 + $0x38] sm:$0xff] %v218_v11 }
  0x23   : > { %235 = vst [vmem:[#allocation2 + $0x60] sm:$0xff] %v219_v12 }
  0x24   : > { %236 = vst [vmem:[#allocation2 + $0x70] sm:$0xff] %v220_v13 }
  0x25   : > { %237 = vst [vmem:[#allocation2 + $0x78] sm:$0xff] %v221_v14 }
  0x26   : > { %238 = vst [vmem:[#allocation2 + $0x28] sm:$0xff] %v222_v15 }
  0x27 PF: > { %s498_s6 = sshll.u32 %s638_s12, 7  ;;  %s273_s9 = scalar_lea.vmem %s832_s2, %s638_s12  ;;  %v247_v32 = vld [vmem:[#allocation2 + $0x40] sm:$0xff]  ;;  %v239_v34 = vld [vmem:[#allocation2 + $0x30] sm:$0xff]  ;;  %v244_v39 = vld [vmem:[#allocation2 + $0x68] sm:$0xff] }
  0x28   : > { %s749_s10 = scalar_lea.vmem [#allocation3], %s498_s6  ;;  %v243_v35 = vld [vmem:[#allocation2 + $0x50] sm:$0xff]  ;;  %v248_v36 = vld [vmem:[#allocation2 + $0x20] sm:$0xff]  ;;  %v241_v42 = vld [vmem:[#allocation2 + $0x58] sm:$0xff]  ;;  %p499_p8 = scmp.ne.s32.totalorder %s638_s12, 2 }
  0x29   : > { %v272_v16 = vld [vmem:[%s749_s10 + $0x78] sm:$0xff]  ;;  %v271_v17 = vld [vmem:[%s749_s10 + $0x70] sm:$0xff]  ;;  %v270_v18 = vld [vmem:[%s749_s10 + $0x68] sm:$0xff] }
  0x2a   : > { %505 = vmatpush.msra.mxu2 %v272_v16  ;;  %506 = vmatpush.msra.mxu3 %v272_v16  ;;  %v269_v19 = vld [vmem:[%s749_s10 + $0x60] sm:$0xff]  ;;  %v268_v20 = vld [vmem:[%s749_s10 + $0x58] sm:$0xff]  ;;  %v267_v21 = vld [vmem:[%s749_s10 + $0x50] sm:$0xff] }
  0x2b   : > { %278 = vmatpush.msra.mxu0 %v272_v16  ;;  %504 = vmatpush.msra.mxu1 %v272_v16  ;;  %v266_v22 = vld [vmem:[%s749_s10 + $0x48] sm:$0xff]  ;;  %v265_v23 = vld [vmem:[%s749_s10 + $0x40] sm:$0xff]  ;;  %v264_v24 = vld [vmem:[%s749_s10 + $0x38] sm:$0xff] }
  0x2c   : > { %508 = vmatpush.msra.mxu2 %v271_v17  ;;  %509 = vmatpush.msra.mxu3 %v271_v17  ;;  %v263_v25 = vld [vmem:[%s749_s10 + $0x30] sm:$0xff]  ;;  %v262_v26 = vld [vmem:[%s749_s10 + $0x28] sm:$0xff]  ;;  %v261_v27 = vld [vmem:[%s749_s10 + $0x20] sm:$0xff] }
  0x2d   : > { %279 = vmatpush.msra.mxu0 %v271_v17  ;;  %507 = vmatpush.msra.mxu1 %v271_v17  ;;  %v260_v28 = vld [vmem:[%s749_s10 + $0x18] sm:$0xff]  ;;  %v259_v29 = vld [vmem:[%s749_s10 + $0x10] sm:$0xff]  ;;  %v258_v30 = vld [vmem:[%s749_s10 + $0x8] sm:$0xff] }
  0x2e   : > { %511 = vmatpush.msra.mxu2 %v270_v18  ;;  %512 = vmatpush.msra.mxu3 %v270_v18  ;;  %v257_v31 = vld [vmem:[%s749_s10] sm:$0xff]  ;;  %v252_v37 = vld [vmem:[#allocation2 + $0x70] sm:$0xff]  ;;  %v253_v41 = vld [vmem:[#allocation2 + $0x78] sm:$0xff] }
  0x2f   : > { %280 = vmatpush.msra.mxu0 %v270_v18  ;;  %510 = vmatpush.msra.mxu1 %v270_v18  ;;  %v251_v33 = vld [vmem:[#allocation2 + $0x60] sm:$0xff]  ;;  %v249_v40 = vld [vmem:[#allocation2 + $0x10] sm:$0xff]  ;;  %v245_v43 = vld [vmem:[#allocation2 + $0x8] sm:$0xff] }
  0x30   : > { %514 = vmatpush.msra.mxu2 %v269_v19  ;;  %515 = vmatpush.msra.mxu3 %v269_v19  ;;  %v240_v38 = vld [vmem:[#allocation2] sm:$0xff]  ;;  %v250_v44 = vld [vmem:[#allocation2 + $0x38] sm:$0xff]  ;;  %v254_v45 = vld [vmem:[#allocation2 + $0x28] sm:$0xff] }
  0x31   : > { %281 = vmatpush.msra.mxu0 %v269_v19  ;;  %513 = vmatpush.msra.mxu1 %v269_v19  ;;  %v242_v46 = vld [vmem:[#allocation2 + $0x18] sm:$0xff]  ;;  %v246_v47 = vld [vmem:[#allocation2 + $0x48] sm:$0xff]  ;;  %v589_v48 = vld [vmem:[%s273_s9] ss:$0 sm:$0xff] }
  0x32   : > { %517 = vmatpush.msra.mxu2 %v268_v20  ;;  %518 = vmatpush.msra.mxu3 %v268_v20 }
  0x33   : > { %282 = vmatpush.msra.mxu0 %v268_v20  ;;  %516 = vmatpush.msra.mxu1 %v268_v20 }
  0x34   : > { %520 = vmatpush.msra.mxu2 %v267_v21  ;;  %521 = vmatpush.msra.mxu3 %v267_v21 }
  0x35   : > { %283 = vmatpush.msra.mxu0 %v267_v21  ;;  %519 = vmatpush.msra.mxu1 %v267_v21 }
  0x36   : > { %523 = vmatpush.msra.mxu2 %v266_v22  ;;  %524 = vmatpush.msra.mxu3 %v266_v22 }
  0x37   : > { %284 = vmatpush.msra.mxu0 %v266_v22  ;;  %522 = vmatpush.msra.mxu1 %v266_v22 }
  0x38   : > { %526 = vmatpush.msra.mxu2 %v265_v23  ;;  %527 = vmatpush.msra.mxu3 %v265_v23 }
  0x39   : > { %285 = vmatpush.msra.mxu0 %v265_v23  ;;  %525 = vmatpush.msra.mxu1 %v265_v23 }
  0x3a   : > { %529 = vmatpush.msra.mxu2 %v264_v24  ;;  %530 = vmatpush.msra.mxu3 %v264_v24 }
  0x3b   : > { %286 = vmatpush.msra.mxu0 %v264_v24  ;;  %528 = vmatpush.msra.mxu1 %v264_v24 }
  0x3c   : > { %532 = vmatpush.msra.mxu2 %v263_v25  ;;  %533 = vmatpush.msra.mxu3 %v263_v25 }
  0x3d   : > { %287 = vmatpush.msra.mxu0 %v263_v25  ;;  %531 = vmatpush.msra.mxu1 %v263_v25 }
  0x3e   : > { %535 = vmatpush.msra.mxu2 %v262_v26  ;;  %536 = vmatpush.msra.mxu3 %v262_v26 }
  0x3f   : > { %288 = vmatpush.msra.mxu0 %v262_v26  ;;  %534 = vmatpush.msra.mxu1 %v262_v26 }
  0x40   : > { %538 = vmatpush.msra.mxu2 %v261_v27  ;;  %539 = vmatpush.msra.mxu3 %v261_v27 }
  0x41   : > { %289 = vmatpush.msra.mxu0 %v261_v27  ;;  %537 = vmatpush.msra.mxu1 %v261_v27 }
  0x42   : > { %541 = vmatpush.msra.mxu2 %v260_v28  ;;  %542 = vmatpush.msra.mxu3 %v260_v28 }
  0x43   : > { %290 = vmatpush.msra.mxu0 %v260_v28  ;;  %540 = vmatpush.msra.mxu1 %v260_v28 }
  0x44   : > { %544 = vmatpush.msra.mxu2 %v259_v29  ;;  %545 = vmatpush.msra.mxu3 %v259_v29 }
  0x45   : > { %291 = vmatpush.msra.mxu0 %v259_v29  ;;  %543 = vmatpush.msra.mxu1 %v259_v29 }
  0x46   : > { %547 = vmatpush.msra.mxu2 %v258_v30  ;;  %548 = vmatpush.msra.mxu3 %v258_v30 }
  0x47   : > { %292 = vmatpush.msra.mxu0 %v258_v30  ;;  %546 = vmatpush.msra.mxu1 %v258_v30 }
  0x48   : > { %550 = vmatpush.msra.mxu2 %v257_v31  ;;  %551 = vmatpush.msra.mxu3 %v257_v31 }
  0x49   : > { %318 = vmatmul.f32.vlgmr.msra.gmra.mxu2 %v247_v32  ;;  %330 = vmatmul.f32.vlgmr.msra.gmra.mxu3 %v251_v33 }
  0x4a   : > { %293 = vmatpush.msra.mxu0 %v257_v31  ;;  %549 = vmatpush.msra.mxu1 %v257_v31 }
  0x4b   : > { %294 = vmatmul.f32.vlgmr.msra.gmra.mxu0 %v239_v34  ;;  %306 = vmatmul.f32.vlgmr.msra.gmra.mxu1 %v243_v35 }
  0x51   : > { %321 = vmatmul.f32.gmra.mxu2 %v248_v36  ;;  %333 = vmatmul.f32.gmra.mxu3 %v252_v37 }
  0x53   : > { %297 = vmatmul.f32.gmra.mxu0 %v240_v38  ;;  %309 = vmatmul.f32.gmra.mxu1 %v244_v39 }
  0x59   : > { %324 = vmatmul.f32.gmra.mxu2 %v249_v40  ;;  %336 = vmatmul.f32.gmra.mxu3 %v253_v41 }
  0x5b   : > { %300 = vmatmul.f32.gmra.mxu0 %v241_v42  ;;  %312 = vmatmul.f32.gmra.mxu1 %v245_v43 }
  0x61   : > { %327 = vmatmul.f32.gmra.mxu2 %v250_v44  ;;  %339 = vmatmul.f32.gmra.mxu3 %v254_v45 }
  0x63   : > { %303 = vmatmul.f32.gmra.mxu0 %v242_v46  ;;  %315 = vmatmul.f32.gmra.mxu1 %v246_v47 }
  0xc8   : > { %v295_v49 = vpop.f32.mrf.mxu0  ;;  %v307_v50 = vpop.f32.mrf.mxu1 }
  0xc9   : > { %v296_v51 = vadd.f32 %v589_v48, %v295_v49  ;;  %v308_v52 = vadd.f32 %v589_v48, %v307_v50 }
  0xcb   : > { %v343_v53 = vmax.f32 %v296_v51, 0.0  ;;  %v347_v54 = vmax.f32 %v308_v52, 0.0 }
  0xcc   : > { %v319_v55 = vpop.f32.mrf.mxu2  ;;  %v331_v56 = vpop.f32.mrf.mxu3 }
  0xcd   : > { %359 = vst [vmem:[#allocation2 + $0x30] sm:$0xff] %v343_v53  ;;  %v320_v57 = vadd.f32 %v589_v48, %v319_v55  ;;  %v332_v58 = vadd.f32 %v589_v48, %v331_v56 }
  0xce   : > { %363 = vst [vmem:[#allocation2 + $0x50] sm:$0xff] %v347_v54 }
  0xcf   : > { %v351_v59 = vmax.f32 %v320_v57, 0.0  ;;  %v355_v60 = vmax.f32 %v332_v58, 0.0 }
  0xd0   : > { %v298_v61 = vpop.f32.mrf.mxu0  ;;  %v310_v62 = vpop.f32.mrf.mxu1 }
  0xd1   : > { %367 = vst [vmem:[#allocation2 + $0x40] sm:$0xff] %v351_v59  ;;  %v299_v63 = vadd.f32 %v589_v48, %v298_v61  ;;  %v311_v0 = vadd.f32 %v589_v48, %v310_v62 }
  0xd2   : > { %371 = vst [vmem:[#allocation2 + $0x60] sm:$0xff] %v355_v60 }
  0xd3   : > { %v344_v1 = vmax.f32 %v299_v63, 0.0  ;;  %v348_v2 = vmax.f32 %v311_v0, 0.0 }
  0xd4   : > { %v322_v3 = vpop.f32.mrf.mxu2  ;;  %v334_v4 = vpop.f32.mrf.mxu3 }
  0xd5   : > { %360 = vst [vmem:[#allocation2] sm:$0xff] %v344_v1  ;;  %v323_v5 = vadd.f32 %v589_v48, %v322_v3  ;;  %v335_v6 = vadd.f32 %v589_v48, %v334_v4 }
  0xd6   : > { %364 = vst [vmem:[#allocation2 + $0x68] sm:$0xff] %v348_v2 }
  0xd7   : > { %v352_v7 = vmax.f32 %v323_v5, 0.0  ;;  %v356_v8 = vmax.f32 %v335_v6, 0.0 }
  0xd8   : > { %v301_v9 = vpop.f32.mrf.mxu0  ;;  %v313_v10 = vpop.f32.mrf.mxu1 }
  0xd9   : > { %368 = vst [vmem:[#allocation2 + $0x20] sm:$0xff] %v352_v7  ;;  %v302_v11 = vadd.f32 %v589_v48, %v301_v9  ;;  %v314_v12 = vadd.f32 %v589_v48, %v313_v10 }
  0xda   : > { %372 = vst [vmem:[#allocation2 + $0x70] sm:$0xff] %v356_v8 }
  0xdb   : > { %v345_v13 = vmax.f32 %v302_v11, 0.0  ;;  %v349_v14 = vmax.f32 %v314_v12, 0.0 }
  0xdc   : > { %v325_v15 = vpop.f32.mrf.mxu2  ;;  %v337_v16 = vpop.f32.mrf.mxu3 }
  0xdd   : > { %361 = vst [vmem:[#allocation2 + $0x58] sm:$0xff] %v345_v13  ;;  %v326_v17 = vadd.f32 %v589_v48, %v325_v15  ;;  %v338_v18 = vadd.f32 %v589_v48, %v337_v16 }
  0xde   : > { %365 = vst [vmem:[#allocation2 + $0x8] sm:$0xff] %v349_v14 }
  0xdf   : > { %v353_v19 = vmax.f32 %v326_v17, 0.0  ;;  %v357_v20 = vmax.f32 %v338_v18, 0.0 }
  0xe0   : > { %v304_v21 = vpop.f32.mrf.mxu0  ;;  %v316_v22 = vpop.f32.mrf.mxu1 }
  0xe1   : > { %369 = vst [vmem:[#allocation2 + $0x10] sm:$0xff] %v353_v19  ;;  %v305_v23 = vadd.f32 %v589_v48, %v304_v21  ;;  %v317_v24 = vadd.f32 %v589_v48, %v316_v22 }
  0xe2   : > { %373 = vst [vmem:[#allocation2 + $0x78] sm:$0xff] %v357_v20 }
  0xe3   : > { %v346_v25 = vmax.f32 %v305_v23, 0.0  ;;  %v350_v26 = vmax.f32 %v317_v24, 0.0 }
  0xe4   : > { %v328_v27 = vpop.f32.mrf.mxu2  ;;  %v340_v28 = vpop.f32.mrf.mxu3 }
  0xe5   : > { %362 = vst [vmem:[#allocation2 + $0x18] sm:$0xff] %v346_v25  ;;  %v329_v29 = vadd.f32 %v589_v48, %v328_v27  ;;  %v341_v30 = vadd.f32 %v589_v48, %v340_v28 }
  0xe6   : > { %366 = vst [vmem:[#allocation2 + $0x48] sm:$0xff] %v350_v26  ;;  %378 = sbr.rel (%p499_p8) target bundleno = 252 (0xfc), region = 44 }
  0xe7   : > { %v354_v31 = vmax.f32 %v329_v29, 0.0  ;;  %v358_v32 = vmax.f32 %v341_v30, 0.0 }
  0xe9   : > { %370 = vst [vmem:[#allocation2 + $0x38] sm:$0xff] %v354_v31 }
  0xea   : > { %374 = vst [vmem:[#allocation2 + $0x28] sm:$0xff] %v358_v32 }
  0xeb   : > { %v379_v33 = vld [vmem:[#allocation2 + $0x30] sm:$0xff]  ;;  %v380_v34 = vld [vmem:[#allocation2] sm:$0xff]  ;;  %v381_v35 = vld [vmem:[#allocation2 + $0x58] sm:$0xff] }
  0xec   : > { %395 = vst [vmem:[%s833_s3] sm:$0xff] %v379_v33  ;;  %v382_v36 = vld [vmem:[#allocation2 + $0x18] sm:$0xff]  ;;  %v383_v37 = vld [vmem:[#allocation2 + $0x50] sm:$0xff]  ;;  %v384_v38 = vld [vmem:[#allocation2 + $0x68] sm:$0xff] }
  0xed   : > { %396 = vst [vmem:[%s833_s3 + $0x8] sm:$0xff] %v380_v34  ;;  %v385_v39 = vld [vmem:[#allocation2 + $0x8] sm:$0xff]  ;;  %v387_v41 = vld [vmem:[#allocation2 + $0x40] sm:$0xff]  ;;  %v389_v43 = vld [vmem:[#allocation2 + $0x10] sm:$0xff] }
  0xee   : > { %397 = vst [vmem:[%s833_s3 + $0x10] sm:$0xff] %v381_v35  ;;  %v386_v40 = vld [vmem:[#allocation2 + $0x48] sm:$0xff]  ;;  %v388_v42 = vld [vmem:[#allocation2 + $0x20] sm:$0xff]  ;;  %v392_v46 = vld [vmem:[#allocation2 + $0x70] sm:$0xff] }
  0xef   : > { %398 = vst [vmem:[%s833_s3 + $0x18] sm:$0xff] %v382_v36  ;;  %v391_v45 = vld [vmem:[#allocation2 + $0x60] sm:$0xff]  ;;  %v393_v47 = vld [vmem:[#allocation2 + $0x78] sm:$0xff] }
  0xf0   : > { %399 = vst [vmem:[%s833_s3 + $0x20] sm:$0xff] %v383_v37  ;;  %v390_v44 = vld [vmem:[#allocation2 + $0x38] sm:$0xff] }
  0xf1   : > { %400 = vst [vmem:[%s833_s3 + $0x28] sm:$0xff] %v384_v38  ;;  %v394_v48 = vld [vmem:[#allocation2 + $0x28] sm:$0xff] }
  0xf2   : > { %401 = vst [vmem:[%s833_s3 + $0x30] sm:$0xff] %v385_v39 }
  0xf3   : > { %402 = vst [vmem:[%s833_s3 + $0x38] sm:$0xff] %v386_v40 }
  0xf4   : > { %403 = vst [vmem:[%s833_s3 + $0x40] sm:$0xff] %v387_v41 }
  0xf5   : > { %404 = vst [vmem:[%s833_s3 + $0x48] sm:$0xff] %v388_v42 }
  0xf6   : > { %405 = vst [vmem:[%s833_s3 + $0x50] sm:$0xff] %v389_v43 }
  0xf7   : > { %406 = vst [vmem:[%s833_s3 + $0x58] sm:$0xff] %v390_v44 }
  0xf8   : > { %407 = vst [vmem:[%s833_s3 + $0x60] sm:$0xff] %v391_v45 }
  0xf9   : > { %408 = vst [vmem:[%s833_s3 + $0x68] sm:$0xff] %v392_v46 }
  0xfa   : > { %409 = vst [vmem:[%s833_s3 + $0x70] sm:$0xff] %v393_v47 }
  0xfb   : > { %410 = vst [vmem:[%s833_s3 + $0x78] sm:$0xff] %v394_v48 }
  0xfc PF: > { %s14_s14 = sadd.s32 1, %s646_s14   ;;  %s834_s12 = smov %s642_s13 }
  0xfd   : > { %p11_p9 = scmp.ge.s32.totalorder %s14_s14, 5   ;;  %s835_s13 = smov %s837_s16 }
  0xff   :  { %13 = sbr.rel (!%p11_p9) target bundleno = 2 (0x2), region = 77 }
 0x104   :  { %433 = vsyncpa [#allocation4], 1 }
 0x105   :  { %435 = vsyncpa [#allocation4 + $0x1], 1 }

</bundles_post_ra>
